<compile_context>
chip_gen: v7x
topology: tpu7x:2x2x1
jax: 0.10.0
libtpu: 0.0.40
codegen_flags: <defaults>
</compile_context>

<pallas_src>
import functools

import jax
import jax.numpy as jnp
import numpy as np
from jax.experimental import pallas as pl
from jax.experimental.pallas import tpu as pltpu


# ------------------------------ configuration --------------------------------
INPUT_SIZE = 32        # feature dimension (small-shape stand-in for 768)
NUM_CLASSES = 2        # spam / ham
N_SV = 64              # number of support vectors in the synthetic fitted SVM
EPS = 1e-7             # probability clip used by the module
LOGIT_CLIP = float(np.log((1.0 - EPS) / EPS))   # clip(p,EPS,1-EPS) <=> clip(logit, +-L)


# --------------------------------- kernel ------------------------------------
def svm_rbf_forward_kernel(x_ref, w_ref, bias_ref, alpha_ref, out_ref, *,
                           gamma, platt_const, logit_clip):
    """RBF-SVM predict_proba -> logit for one batch tile.

    x_ref:     (TB, F)     float32  input features (batch-major block)
    w_ref:     (N_SV, F)   float32  2*gamma*SV            (resident)
    bias_ref:  (N_SV, 1)   float32  -gamma*||sv_j||^2     (resident)
    alpha_ref: (N_SV, 1)   float32  probA * dual_coef     (resident)
    out_ref:   (2, TB)     float32  logits; row 0 = class 0, row 1 = class 1
    """
    x = x_ref[...].T                                 # (F, TB)  XLU transpose -> lane-dense batch
    sq = jnp.sum(x * x, axis=0, keepdims=True)       # (1, TB)  ||x||^2 (XLU sublane reduce)

    # -gamma*||x - sv_j||^2 = (2*gamma*SV) @ x - gamma*||x||^2 - gamma*||sv_j||^2
    z = jnp.dot(w_ref[...], x, preferred_element_type=jnp.float32)   # (N_SV, TB)  MXU
    k = jnp.exp(z - gamma * sq + bias_ref[...])                      # (N_SV, TB)  EUP

    # Platt: t = probA * (sum_j dual_coef_j * k_j + intercept) + probB
    t = jnp.sum(alpha_ref[...] * k, axis=0, keepdims=True) + platt_const   # (1, TB)

    # p1 = sigmoid(-t)  =>  logit(p1) = -t, logit(p0) = +t;  the module's
    # clip(probs, EPS, 1-EPS) is exactly clip(t, -L, L) with L = log((1-EPS)/EPS).
    tc = jnp.clip(t, -logit_clip, logit_clip)
    out_ref[...] = jnp.concatenate([tc, -tc], axis=0)                # single (2, TB) store


# -------------------------------- wrapper -------------------------------------
def _round_up(n, m):
    return ((n + m - 1) // m) * m


def _default_tile_b(batch):
    """One grid step on single-TC v5e/v6e; >=2 parallel steps on dual-TC v7x."""
    bp = _round_up(batch, 128)
    try:
        kind = jax.devices()[0].device_kind.lower()
    except Exception:
        kind = ""
    if "v7" in kind and bp >= 256:
        bp = _round_up(pl.cdiv(bp, 2), 128)          # feed both v7x TensorCores
    return min(bp, 1024)


@functools.partial(jax.jit, static_argnames=("gamma", "platt_const", "tile_b"))
def svm_forward(x, w2g, sv_bias, alpha_col, *, gamma, platt_const, tile_b=None):
    """Fitted-path forward: logits = log(clip(predict_proba(x)) / (1 - clip(...)))."""
    b, f = x.shape
    n_sv = w2g.shape[0]

    if tile_b is None:
        tile_b = _default_tile_b(b)
    bp = _round_up(b, tile_b)
    if bp != b:
        x = jnp.pad(x, ((0, bp - b), (0, 0)))        # batch padding only when needed

    kernel = functools.partial(
        svm_rbf_forward_kernel,
        gamma=float(gamma), platt_const=float(platt_const), logit_clip=LOGIT_CLIP)

    out_t = pl.pallas_call(
        kernel,
        out_shape=jax.ShapeDtypeStruct((NUM_CLASSES, bp), jnp.float32),
        grid=(bp // tile_b,),
        in_specs=[
            pl.BlockSpec((tile_b, f), lambda i: (i, 0)),   # streamed x tile (F = full minor dim)
            pl.BlockSpec((n_sv, f), lambda i: (0, 0)),     # 2*gamma*SV (resident)
            pl.BlockSpec((n_sv, 1), lambda i: (0, 0)),     # -gamma*||sv||^2 (resident)
            pl.BlockSpec((n_sv, 1), lambda i: (0, 0)),     # probA*dual_coef (resident)
        ],
        out_specs=pl.BlockSpec((NUM_CLASSES, tile_b), lambda i: (0, i)),
        compiler_params=pltpu.CompilerParams(
            dimension_semantics=("parallel",)),
    )(x, w2g, sv_bias, alpha_col)

    return jnp.transpose(out_t[:, :b])               # (B, NUM_CLASSES)


# -------------------------- deterministic "fit" -------------------------------
def make_synthetic_fitted_svm(key):
    """Deterministically synthesize a fitted binary RBF SVC + Platt calibration."""
    k_sv, k_dc = jax.random.split(key)
    sv = jax.random.normal(k_sv, (N_SV, INPUT_SIZE), dtype=jnp.float32)
    mag = jax.random.uniform(k_dc, (N_SV,), dtype=jnp.float32, minval=0.2, maxval=1.0)
    signs = jnp.where(jnp.arange(N_SV) % 2 == 0, 1.0, -1.0).astype(jnp.float32)
    dual_coef = mag * signs                          # y_i * alpha_i
    intercept = 0.1
    gamma = 1.0 / INPUT_SIZE                         # 'scale' for unit-variance inputs
    probA, probB = -1.5, 0.05                        # Platt calibration parameters

    # Hoisted / precomputed kernel operands (exact algebraic refactors).
    w2g = (2.0 * gamma * sv).astype(jnp.float32)                                   # (N_SV, F)
    sv_bias = (-gamma * jnp.sum(sv * sv, axis=1, keepdims=True)).astype(jnp.float32)  # (N_SV, 1)
    alpha_col = (probA * dual_coef)[:, None].astype(jnp.float32)                   # (N_SV, 1)
    platt_const = float(probA * intercept + probB)                                 # scalar

    raw = dict(sv=sv, dual_coef=dual_coef, intercept=intercept,
               gamma=gamma, probA=probA, probB=probB)
    return (w2g, sv_bias, alpha_col, gamma, platt_const), raw


# -------------------------------- reference -----------------------------------
def reference_forward(x, sv, dual_coef, intercept, gamma, probA, probB):
    """NumPy reference matching the module's fitted predict_proba -> logit path."""
    x = np.asarray(x, np.float64)
    sv = np.asarray(sv, np.float64)
    dual_coef = np.asarray(dual_coef, np.float64)
    d2 = ((x[:, None, :] - sv[None, :, :]) ** 2).sum(-1)       # (B, N_SV)
    K = np.exp(-gamma * d2)
    f = K @ dual_coef + intercept
    p1 = 1.0 / (1.0 + np.exp(probA * f + probB))
    probs = np.stack([1.0 - p1, p1], axis=1)
    probs = np.clip(probs, EPS, 1.0 - EPS)
    return np.log(probs / (1.0 - probs)).astype(np.float32)


# ---------------------------------- main ---------------------------------------
if __name__ == "__main__":
    key = jax.random.PRNGKey(0)
    k_x, k_svm = jax.random.split(key)

    BATCH = 256   # small demo batch; multiple of 128 so no padding op is emitted
    x = jax.random.normal(k_x, (BATCH, INPUT_SIZE), dtype=jnp.float32)

    (w2g, sv_bias, alpha_col, gamma, platt_const), raw = make_synthetic_fitted_svm(k_svm)

    # Fitted path (Pallas kernel).
    logits = svm_forward(x, w2g, sv_bias, alpha_col,
                         gamma=gamma, platt_const=platt_const)
    logits = jax.block_until_ready(logits)

    # Correctness check against the pure-NumPy SVM predict_proba -> logit path.
    ref = reference_forward(np.asarray(x), raw["sv"], raw["dual_coef"],
                            raw["intercept"], raw["gamma"], raw["probA"], raw["probB"])
    np.testing.assert_allclose(np.asarray(logits), ref, rtol=1e-3, atol=1e-3)

    print("KERNEL_OK")
</pallas_src>

<mosaic_0001>
module attributes {stable_mosaic.version = 11 : i64} {
  func.func @svm_rbf_forward_kernel(%arg0: i32, %arg1: memref<256x32xf32, #tpu.memory_space<vmem>>, %arg2: memref<64x32xf32, #tpu.memory_space<vmem>>, %arg3: memref<64x1xf32, #tpu.memory_space<vmem>>, %arg4: memref<64x1xf32, #tpu.memory_space<vmem>>, %arg5: memref<2x256xf32, #tpu.memory_space<vmem>>) attributes {dimension_semantics = [#tpu.dimension_semantics<parallel>], iteration_bounds = array<i64: 1>, scalar_prefetch = 0 : i64, scratch_operands = 0 : i64, tpu.core_type = #tpu.core_type<tc>, window_params = [{transform_indices = @transform_0, window_bounds = array<i64: 256, 32>}, {pipeline_mode = #tpu.pipeline_mode<synchronous>, transform_indices = @transform_1, window_bounds = array<i64: 64, 32>}, {pipeline_mode = #tpu.pipeline_mode<synchronous>, transform_indices = @transform_2, window_bounds = array<i64: 64, 1>}, {pipeline_mode = #tpu.pipeline_mode<synchronous>, transform_indices = @transform_3, window_bounds = array<i64: 64, 1>}, {transform_indices = @transform_4, window_bounds = array<i64: 2, 256>}]} {
    %c0 = arith.constant 0 : index
    %c0_0 = arith.constant 0 : index
    %0 = vector.load %arg1[%c0, %c0_0] : memref<256x32xf32, #tpu.memory_space<vmem>>, vector<256x32xf32>
    %1 = tpu.transpose %0, [1, 0] : vector<256x32xf32> -> vector<32x256xf32>
    %2 = arith.mulf %1, %1 : vector<32x256xf32>
    %cst = arith.constant dense<0.000000e+00> : vector<256xf32>
    %3 = vector.multi_reduction <add>, %2, %cst [0] : vector<32x256xf32> to vector<256xf32>
    %4 = vector.shape_cast %3 : vector<256xf32> to vector<1x256xf32>
    %c0_1 = arith.constant 0 : index
    %c0_2 = arith.constant 0 : index
    %5 = vector.load %arg2[%c0_1, %c0_2] : memref<64x32xf32, #tpu.memory_space<vmem>>, vector<64x32xf32>
    %cst_3 = arith.constant dense<0.000000e+00> : vector<64x256xf32>
    %6 = tpu.matmul %5, %1, %cst_3 {dimension_numbers = #tpu.dot_dimension_numbers<[1], [0], [0], [1], [0, 0, 1, 1], [], []>} : vector<64x32xf32>, vector<32x256xf32>, vector<64x256xf32> -> vector<64x256xf32>
    %cst_4 = arith.constant 3.125000e-02 : f32
    %7 = vector.broadcast %cst_4 : f32 to vector<1x256xf32>
    %8 = arith.mulf %7, %4 : vector<1x256xf32>
    %9 = vector.broadcast %8 : vector<1x256xf32> to vector<64x256xf32>
    %10 = arith.subf %6, %9 : vector<64x256xf32>
    %c0_5 = arith.constant 0 : index
    %c0_6 = arith.constant 0 : index
    %11 = vector.load %arg3[%c0_5, %c0_6] : memref<64x1xf32, #tpu.memory_space<vmem>>, vector<64x1xf32>
    %12 = vector.broadcast %11 : vector<64x1xf32> to vector<64x256xf32>
    %13 = arith.addf %10, %12 : vector<64x256xf32>
    %14 = math.exp %13 : vector<64x256xf32>
    %c0_7 = arith.constant 0 : index
    %c0_8 = arith.constant 0 : index
    %15 = vector.load %arg4[%c0_7, %c0_8] : memref<64x1xf32, #tpu.memory_space<vmem>>, vector<64x1xf32>
    %16 = vector.broadcast %15 : vector<64x1xf32> to vector<64x256xf32>
    %17 = arith.mulf %16, %14 : vector<64x256xf32>
    %cst_9 = arith.constant dense<0.000000e+00> : vector<256xf32>
    %18 = vector.multi_reduction <add>, %17, %cst_9 [0] : vector<64x256xf32> to vector<256xf32>
    %19 = vector.shape_cast %18 : vector<256xf32> to vector<1x256xf32>
    %cst_10 = arith.constant -1.000000e-01 : f32
    %20 = vector.broadcast %cst_10 : f32 to vector<1x256xf32>
    %21 = arith.addf %19, %20 : vector<1x256xf32>
    %cst_11 = arith.constant -16.1180954 : f32
    %cst_12 = arith.constant 16.1180954 : f32
    %22 = vector.broadcast %cst_11 : f32 to vector<1x256xf32>
    %23 = arith.maximumf %22, %21 : vector<1x256xf32>
    %24 = vector.broadcast %cst_12 : f32 to vector<1x256xf32>
    %25 = arith.minimumf %24, %23 : vector<1x256xf32>
    %cst_13 = arith.constant 0.000000e+00 : f32
    %26 = vector.broadcast %cst_13 : f32 to vector<1x256xf32>
    %27 = arith.subf %26, %25 : vector<1x256xf32>
    %28 = tpu.concatenate %25, %27 in 0 : vector<1x256xf32>, vector<1x256xf32> -> vector<2x256xf32>
    %c0_14 = arith.constant 0 : index
    %c0_15 = arith.constant 0 : index
    %29 = vector.load %arg5[%c0_14, %c0_15] : memref<2x256xf32, #tpu.memory_space<vmem>>, vector<2x256xf32>
    tpu.vector_store %arg5[%c0_14, %c0_15], %28 {strides = array<i32>} : memref<2x256xf32, #tpu.memory_space<vmem>>, vector<2x256xf32>,
    return
  }
  func.func @transform_0(%arg0: i32) -> (i32, i32) {
    %c0_i32 = arith.constant 0 : i32
    %c0_i32_0 = arith.constant 0 : i32
    return %arg0, %c0_i32 : i32, i32
  }
  func.func @transform_1(%arg0: i32) -> (i32, i32) {
    %c0_i32 = arith.constant 0 : i32
    %c0_i32_0 = arith.constant 0 : i32
    %c0_i32_1 = arith.constant 0 : i32
    return %c0_i32, %c0_i32_0 : i32, i32
  }
  func.func @transform_2(%arg0: i32) -> (i32, i32) {
    %c0_i32 = arith.constant 0 : i32
    %c0_i32_0 = arith.constant 0 : i32
    %c0_i32_1 = arith.constant 0 : i32
    return %c0_i32, %c0_i32_0 : i32, i32
  }
  func.func @transform_3(%arg0: i32) -> (i32, i32) {
    %c0_i32 = arith.constant 0 : i32
    %c0_i32_0 = arith.constant 0 : i32
    %c0_i32_1 = arith.constant 0 : i32
    return %c0_i32, %c0_i32_0 : i32, i32
  }
  func.func @transform_4(%arg0: i32) -> (i32, i32) {
    %c0_i32 = arith.constant 0 : i32
    %c0_i32_0 = arith.constant 0 : i32
    return %c0_i32, %arg0 : i32, i32
  }
}

</mosaic_0001>

<bundles_post_ra>
// kernel: svm_forward.1
= control target key start
LH: loop header
LB: loop body
LE: loop exit
PB: predicated region body
PF: predicated region fallthrough
CT: control target
= control target key end

     0   :  { %s859_s0 = inlined_call_operand.vmem [shape: f32[256,32], index: 0, kind: input, shape index: {}]   ;;  %s860_s1 = inlined_call_operand.vmem [shape: f32[64,32], index: 1, kind: input, shape index: {}]   ;;  %s861_s2 = inlined_call_operand.vmem [shape: f32[64,1], index: 2, kind: input, shape index: {}]   ;;  %s862_s3 = inlined_call_operand.vmem [shape: f32[64,1], index: 3, kind: input, shape index: {}]   ;;  %s863_s4 = inlined_call_operand.hbm [shape: f32[2,256], index: 4, kind: output, shape index: {}]  }
   0x1   :  { %v34_v0 = vld [vmem:[%s859_s0 + $0x80] sm:$0xff]  ;;  %v35_v2 = vld [vmem:[%s859_s0 + $0x88] sm:$0xff]  ;;  %v36_v4 = vld [vmem:[%s859_s0 + $0x90] sm:$0xff] }
   0x2   :  { %v18_v1 = vld [vmem:[%s859_s0] sm:$0xff]  ;;  %82 = vxpose.xlu0.b32.start [1/16] (narrow) %v34_v0, 32  ;;  %v19_v3 = vld [vmem:[%s859_s0 + $0x8] sm:$0xff]  ;;  %v20_v5 = vld [vmem:[%s859_s0 + $0x10] sm:$0xff] }
   0x3   :  { %50 = vxpose.xlu1.b32.start [1/16] (narrow) %v18_v1, 32  ;;  %v37_v6 = vld [vmem:[%s859_s0 + $0x98] sm:$0xff] }
   0x4   :  { %v21_v7 = vld [vmem:[%s859_s0 + $0x18] sm:$0xff] }
   0x6   :  { %83 = vxpose.xlu0.b32.cont [2/16] (narrow) %v35_v2, 32 }
   0x7   :  { %51 = vxpose.xlu1.b32.cont [2/16] (narrow) %v19_v3, 32 }
   0xa   :  { %84 = vxpose.xlu0.b32.cont [3/16] (narrow) %v36_v4, 32 }
   0xb   :  { %52 = vxpose.xlu1.b32.cont [3/16] (narrow) %v20_v5, 32 }
   0xc   :  { %9 = vsyncpa [#allocation3], 0  ;;  %v38_v8 = vld [vmem:[%s859_s0 + $0xa0] sm:$0xff]  ;;  %v39_v10 = vld [vmem:[%s859_s0 + $0xa8] sm:$0xff]  ;;  %v611_v12 = vmov 0.0   ;;  %v612_v34 = vmov 0  }
   0xd   :  { %v22_v9 = vld [vmem:[%s859_s0 + $0x20] sm:$0xff]  ;;  %v23_v11 = vld [vmem:[%s859_s0 + $0x28] sm:$0xff]  ;;  %237 = vmatprep.mubr.f32.mxu0 %v611_v12  ;;  %261 = vmatprep.mubr.f32.mxu1 %v611_v12  ;;  %v40_v13 = vld [vmem:[%s859_s0 + $0xb0] sm:$0xff]  ;;  %vm148_vm0 = vcmask 261120   ;;  %vm498_vm1 = vcmask 1040384  }
   0xe   :  { %85 = vxpose.xlu0.b32.cont [4/16] (narrow) %v37_v6, 32  ;;  %v24_v14 = vld [vmem:[%s859_s0 + $0x30] sm:$0xff]  ;;  %v41_v15 = vld [vmem:[%s859_s0 + $0xb8] sm:$0xff]  ;;  %v42_v17 = vld [vmem:[%s859_s0 + $0xc0] sm:$0xff] }
   0xf   :  { %53 = vxpose.xlu1.b32.cont [4/16] (narrow) %v21_v7, 32  ;;  %v25_v16 = vld [vmem:[%s859_s0 + $0x38] sm:$0xff]  ;;  %v26_v18 = vld [vmem:[%s859_s0 + $0x40] sm:$0xff]  ;;  %v43_v19 = vld [vmem:[%s859_s0 + $0xc8] sm:$0xff] }
  0x10   :  { %v27_v20 = vld [vmem:[%s859_s0 + $0x48] sm:$0xff]  ;;  %v44_v21 = vld [vmem:[%s859_s0 + $0xd0] sm:$0xff]  ;;  %v45_v23 = vld [vmem:[%s859_s0 + $0xd8] sm:$0xff] }
  0x11   :  { %v28_v22 = vld [vmem:[%s859_s0 + $0x50] sm:$0xff]  ;;  %v29_v24 = vld [vmem:[%s859_s0 + $0x58] sm:$0xff]  ;;  %v46_v25 = vld [vmem:[%s859_s0 + $0xe0] sm:$0xff] }
  0x12   :  { %86 = vxpose.xlu0.b32.cont [5/16] (narrow) %v38_v8, 32  ;;  %v30_v26 = vld [vmem:[%s859_s0 + $0x60] sm:$0xff]  ;;  %v47_v27 = vld [vmem:[%s859_s0 + $0xe8] sm:$0xff]  ;;  %v48_v29 = vld [vmem:[%s859_s0 + $0xf0] sm:$0xff] }
  0x13   :  { %54 = vxpose.xlu1.b32.cont [5/16] (narrow) %v22_v9, 32  ;;  %v31_v28 = vld [vmem:[%s859_s0 + $0x68] sm:$0xff]  ;;  %v32_v30 = vld [vmem:[%s859_s0 + $0x70] sm:$0xff]  ;;  %v49_v31 = vld [vmem:[%s859_s0 + $0xf8] sm:$0xff] }
  0x14   :  { %v33_v32 = vld [vmem:[%s859_s0 + $0x78] sm:$0xff]  ;;  %v305_v33 = vld [vmem:[%s861_s2 + $0x8] sm:$0xff]  ;;  %v306_v35 = vld [vmem:[%s861_s2 + $0x10] sm:$0xff] }
  0x15   :  { %v307_v36 = vld [vmem:[%s861_s2 + $0x18] sm:$0xff]  ;;  %v304_v37 = vld [vmem:[%s861_s2] sm:$0xff]  ;;  %v309_v39 = vld [vmem:[%s861_s2 + $0x28] sm:$0xff] }
  0x16   :  { %87 = vxpose.xlu0.b32.cont [6/16] (narrow) %v39_v10, 32  ;;  %v308_v38 = vld [vmem:[%s861_s2 + $0x20] sm:$0xff]  ;;  %v310_v40 = vld [vmem:[%s861_s2 + $0x30] sm:$0xff]  ;;  %v311_v41 = vld [vmem:[%s861_s2 + $0x38] sm:$0xff] }
  0x17   :  { %55 = vxpose.xlu1.b32.cont [6/16] (narrow) %v23_v11, 32  ;;  %v400_v42 = vld [vmem:[%s862_s3] sm:$0xff]  ;;  %v401_v43 = vld [vmem:[%s862_s3 + $0x8] sm:$0xff]  ;;  %v402_v44 = vld [vmem:[%s862_s3 + $0x10] sm:$0xff] }
  0x18   :  { %v403_v45 = vld [vmem:[%s862_s3 + $0x18] sm:$0xff]  ;;  %v404_v46 = vld [vmem:[%s862_s3 + $0x20] sm:$0xff]  ;;  %v405_v47 = vld [vmem:[%s862_s3 + $0x28] sm:$0xff] }
  0x19   :  { %v406_v48 = vld [vmem:[%s862_s3 + $0x30] sm:$0xff]  ;;  %v407_v49 = vld [vmem:[%s862_s3 + $0x38] sm:$0xff]  ;;  %v140_v8 = vld [vmem:[%s860_s1] sm:$0xff] }
  0x1a   :  { %88 = vxpose.xlu0.b32.cont [7/16] (narrow) %v40_v13, 32  ;;  %v144_v9 = vld [vmem:[%s860_s1 + $0x20] sm:$0xff]  ;;  %v141_v10 = vld [vmem:[%s860_s1 + $0x8] sm:$0xff]  ;;  %v142_v13 = vld [vmem:[%s860_s1 + $0x10] sm:$0xff] }
  0x1b   :  { %56 = vxpose.xlu1.b32.cont [7/16] (narrow) %v24_v14, 32  ;;  %v145_v11 = vld [vmem:[%s860_s1 + $0x28] sm:$0xff]  ;;  %v146_v14 = vld [vmem:[%s860_s1 + $0x30] sm:$0xff] }
  0x1e   :  { %89 = vxpose.xlu0.b32.cont [8/16] (narrow) %v41_v15, 32  ;;  %v143_v15 = vld [vmem:[%s860_s1 + $0x18] sm:$0xff] }
  0x1f   :  { %57 = vxpose.xlu1.b32.cont [8/16] (narrow) %v25_v16, 32  ;;  %v147_v16 = vld [vmem:[%s860_s1 + $0x38] sm:$0xff]  ;;  %s613_s1 = smov [#allocation2]  }
  0x20   :  { %s519_s19 = sshll.u32 %s613_s1, 4  ;;  %s520_s19 = int_to_ptr.vmem [resolvable:$true] %s519_s19 }
  0x21   :  { %s587_s20 = scalar_lea.vmem %s520_s19, 64  ;;  %p592_p1 = scmp.lt.s32.totalorder %s520_s19, %s520_s19 }
  0x22   :  { %90 = vxpose.xlu0.b32.cont [9/16] (narrow) %v42_v17, 32  ;;  %p588_p0 = scmp.ne.s32.totalorder %s520_s19, %s587_s20  ;;  %p593_p2 = scmp.lt.s32.totalorder %s587_s20, %s587_s20 }
  0x23   :  { %58 = vxpose.xlu1.b32.cont [9/16] (narrow) %v26_v18, 32 }
  0x24   :  { %p594_p3 = por %p593_p2, %p592_p1 }
  0x26   :  { %91 = vxpose.xlu0.b32.cont [10/16] (narrow) %v43_v19, 32  ;;  %p595_p4 = pnand %p594_p3, %p588_p0 }
  0x27   :  { %59 = vxpose.xlu1.b32.cont [10/16] (narrow) %v27_v20, 32 }
  0x2a   :  { %92 = vxpose.xlu0.b32.cont [11/16] (narrow) %v44_v21, 32 }
  0x2b   :  { %60 = vxpose.xlu1.b32.cont [11/16] (narrow) %v28_v22, 32 }
  0x2e   :  { %93 = vxpose.xlu0.b32.cont [12/16] (narrow) %v45_v23, 32 }
  0x2f   :  { %61 = vxpose.xlu1.b32.cont [12/16] (narrow) %v29_v24, 32 }
  0x32   :  { %94 = vxpose.xlu0.b32.cont [13/16] (narrow) %v46_v25, 32 }
  0x33   :  { %62 = vxpose.xlu1.b32.cont [13/16] (narrow) %v30_v26, 32 }
  0x36   :  { %95 = vxpose.xlu0.b32.cont [14/16] (narrow) %v47_v27, 32 }
  0x37   :  { %63 = vxpose.xlu1.b32.cont [14/16] (narrow) %v31_v28, 32 }
  0x3a   :  { %96 = vxpose.xlu0.b32.cont [15/16] (narrow) %v48_v29, 32 }
  0x3b   :  { %64 = vxpose.xlu1.b32.cont [15/16] (narrow) %v32_v30, 32 }
  0x3e   :  { %97 = vxpose.xlu0.b32.end [16/16] (narrow) %v49_v31, 32 }
  0x3f   :  { %65 = vxpose.xlu1.b32.end [16/16] (narrow) %v33_v32, 32 }
  0x5d   :  { %554 = vset.pattern.permute.xlu1 %v612_v34 }
  0x5e   :  { %319 = vperm.xlu1 %554, %v305_v33  }
  0x62   :  { %324 = vperm.xlu1 %554, %v306_v35  }
  0x66   :  { %329 = vperm.xlu1 %554, %v307_v36  }
  0x67   :  { %553 = vset.pattern.permute.xlu0 %v612_v34 }
  0x68   :  { %314 = vperm.xlu0 %553, %v304_v37  }
  0x6a   :  { %334 = vperm.xlu1 %554, %v308_v38  }
  0x6c   :  { %339 = vperm.xlu0 %553, %v309_v39  }
  0x6e   :  { %344 = vperm.xlu1 %554, %v310_v40  }
  0x70   :  { %349 = vperm.xlu0 %553, %v311_v41  }
  0x72   :  { %410 = vperm.xlu1 %554, %v400_v42  }
  0x74   :  { %415 = vperm.xlu0 %553, %v401_v43  }
  0x76   :  { %420 = vperm.xlu1 %554, %v402_v44  }
  0x78   :  { %425 = vperm.xlu0 %553, %v403_v45  }
  0x7a   :  { %430 = vperm.xlu1 %554, %v404_v46  }
  0x7c   :  { %435 = vperm.xlu0 %553, %v405_v47  }
  0x7e   :  { %440 = vperm.xlu1 %554, %v406_v48  }
  0x80   :  { %445 = vperm.xlu0 %553, %v407_v49  }
  0x82   :  { %v98_v50 = vpop.trf.xlu0 }
  0x83   :  { %v66_v51 = vpop.trf.xlu1  ;;  %v115_v52 = vmul.f32 %v98_v50, %v98_v50 }
  0x84   :  { %v114_v53 = vmul.f32 %v66_v51, %v66_v51 }
  0x86   :  { %v99_v54 = vpop.trf.xlu0 }
  0x87   :  { %v67_v55 = vpop.trf.xlu1  ;;  %v117_v56 = vmul.f32 %v99_v54, %v99_v54  ;;  %v538_v58 = vpack.c.bf16 %v99_v54, %v98_v50 }
  0x88   :  { %v116_v57 = vmul.f32 %v67_v55, %v67_v55  ;;  %v540_v59 = vpack.c.bf16 %v67_v55, %v66_v51 }
  0x89   :  { %v131_v60 = vadd.f32 %v117_v56, %v115_v52  ;;  %539 = vmatprep.subr.bf16.mxu0 %v538_v58  ;;  %546 = vmatprep.subr.bf16.mxu1 %v538_v58 }
  0x8a   :  { %v122_v61 = vadd.f32 %v116_v57, %v114_v53  ;;  %v100_v62 = vpop.trf.xlu0  ;;  %541 = vmatpush1.bf16.msra.mxu0 %v540_v59  ;;  %548 = vmatpush1.bf16.msra.mxu1 %v540_v59 }
  0x8b   :  { %v68_v63 = vpop.trf.xlu1  ;;  %v119_v0 = vmul.f32 %v100_v62, %v100_v62 }
  0x8c   :  { %v118_v1 = vmul.f32 %v68_v63, %v68_v63 }
  0x8d   :  { %v132_v2 = vadd.f32 %v131_v60, %v119_v0 }
  0x8e   :  { %v123_v3 = vadd.f32 %v122_v61, %v118_v1  ;;  %v101_v4 = vpop.trf.xlu0 }
  0x8f   :  { %v69_v5 = vpop.trf.xlu1  ;;  %v542_v6 = vpack.c.bf16 %v101_v4, %v100_v62  ;;  %v121_v18 = vmul.f32 %v101_v4, %v101_v4 }
  0x90   :  { %v544_v7 = vpack.c.bf16 %v69_v5, %v68_v63  ;;  %v120_v17 = vmul.f32 %v69_v5, %v69_v5 }
  0x91   :  { %543 = vmatprep.subr.bf16.mxu0 %v542_v6  ;;  %547 = vmatprep.subr.bf16.mxu1 %v542_v6  ;;  %v133_v20 = vadd.f32 %v132_v2, %v121_v18 }
  0x92   :  { %545 = vmatpush1.bf16.msra.mxu0 %v544_v7  ;;  %549 = vmatpush1.bf16.msra.mxu1 %v544_v7  ;;  %v124_v19 = vadd.f32 %v123_v3, %v120_v17 }
  0x93   :  { %v134_v22 = vrot.slane %v133_v20, 4 }
  0x94   :  { %v125_v21 = vrot.slane %v124_v19, 4 }
  0x95   :  { %527 = vmatmul.mubr.msk.f32.vlgmr.msra.gmra.mrb[0].mxu0 %vm148_vm0, %v140_v8  ;;  %531 = vmatmul.mubr.msk.f32.vlgmr.msra.gmra.mrb[0].mxu1 %vm148_vm0, %v144_v9 }
  0x96   :  { %243 = vmatprep.mubr.f32.mxu0 %v611_v12  ;;  %267 = vmatprep.mubr.f32.mxu1 %v611_v12  ;;  %v126_v23 = vadd.f32 %v125_v21, %v124_v19 }
  0x98   :  { %v127_v24 = vrot.slane %v126_v23, 2 }
  0x99   :  { %528 = vmatmul.mubr.msk.f32.gmra.mrb[2].mxu0 %vm148_vm0, %v141_v10  ;;  %532 = vmatmul.mubr.msk.f32.gmra.mrb[2].mxu1 %vm148_vm0, %v145_v11 }
  0x9a   :  { %249 = vmatprep.mubr.f32.mxu0 %v611_v12  ;;  %273 = vmatprep.mubr.f32.mxu1 %v611_v12  ;;  %v128_v27 = vadd.f32 %v127_v24, %v126_v23 }
  0x9c   :  { %v129_v29 = vrot.slane %v128_v27, 1 }
  0x9d   :  { %529 = vmatmul.mubr.msk.f32.gmra.mrb[4].mxu0 %vm148_vm0, %v142_v13  ;;  %533 = vmatmul.mubr.msk.f32.gmra.mrb[4].mxu1 %vm148_vm0, %v146_v14 }
  0x9e   :  { %255 = vmatprep.mubr.f32.mxu0 %v611_v12  ;;  %279 = vmatprep.mubr.f32.mxu1 %v611_v12  ;;  %v135_v12 = vadd.f32 %v134_v22, %v133_v20  ;;  %v130_v32 = vadd.f32 %v129_v29, %v128_v27 }
  0xa0   :  { %v136_v25 = vrot.slane %v135_v12, 2  ;;  %v825_v35 = vmul.f32 0.03125, %v130_v32 }
  0xa1   :  { %530 = vmatmul.mubr.msk.f32.gmra.mrb[6].mxu0 %vm148_vm0, %v143_v15  ;;  %534 = vmatmul.mubr.msk.f32.gmra.mrb[6].mxu1 %vm148_vm0, %v147_v16 }
  0xa2   :  { %v137_v28 = vadd.f32 %v136_v25, %v135_v12 }
  0xa4   :  { %v138_v31 = vrot.slane %v137_v28, 1 }
  0xa6   :  { %v139_v33 = vadd.f32 %v138_v31, %v137_v28 }
  0xa8   :  { %v827_v37 = vmul.f32 0.03125, %v139_v33 }
  0xdd   :  { %v320_v26 = vpop.permute.xlu1 %319 }
  0xe1   :  { %v325_v30 = vpop.permute.xlu1 %324 }
  0xe5   :  { %v823_v34 = vpop.permute.xlu1 %329 }
  0xe7   :  { %v315_v36 = vpop.permute.xlu0 %314 }
  0xe9   :  { %v335_v46 = vpop.permute.xlu1 %334 }
  0xeb   :  { %v340_v59 = vpop.permute.xlu0 %339 }
  0xed   :  { %v345_v9 = vpop.permute.xlu1 %344 }
  0xef   :  { %v350_v22 = vpop.permute.xlu0 %349 }
 0x168   :  { %v239_v38 = vpop.f32.mrb[0].mxu0  ;;  %v263_v39 = vpop.f32.mrb[0].mxu1 }
 0x169   :  { %v288_v40 = vsub.f32 %v239_v38, %v825_v35  ;;  %v296_v41 = vsub.f32 %v263_v39, %v825_v35  ;;  %v241_v42 = vpop.f32.mrb[1].mxu0  ;;  %v265_v43 = vpop.f32.mrb[1].mxu1 }
 0x16a   :  { %v289_v44 = vsub.f32 %v241_v42, %v827_v37  ;;  %v297_v45 = vsub.f32 %v265_v43, %v827_v37  ;;  %v416_v43 = vpop.permute.xlu0 %415 }
 0x16b   :  { %v352_v47 = vadd.f32 %v315_v36, %v288_v40  ;;  %v360_v61 = vadd.f32 %v335_v46, %v296_v41 }
 0x16c   :  { %v353_v48 = vadd.f32 %v315_v36, %v289_v44  ;;  %v245_v49 = vpop.f32.mrb[2].mxu0  ;;  %v269_v50 = vpop.f32.mrb[2].mxu1  ;;  %v361_v1 = vadd.f32 %v335_v46, %v297_v45 }
 0x16d   :  { %v368_v51 = vmul.f32 1.442695, %v352_v47  ;;  %v290_v52 = vsub.f32 %v245_v49, %v825_v35  ;;  %v298_v53 = vsub.f32 %v269_v50, %v825_v35  ;;  %v247_v54 = vpop.f32.mrb[3].mxu0  ;;  %v271_v55 = vpop.f32.mrb[3].mxu1  ;;  %v384_v14 = vmul.f32 1.442695, %v360_v61 }
 0x16e   :  { %v370_v56 = vmul.f32 1.442695, %v353_v48  ;;  %v291_v57 = vsub.f32 %v247_v54, %v827_v37  ;;  %v299_v58 = vsub.f32 %v271_v55, %v827_v37  ;;  %v386_v23 = vmul.f32 1.442695, %v361_v1  ;;  %v411_v36 = vpop.permute.xlu1 %410 }
 0x16f   :  { %v354_v60 = vadd.f32 %v320_v26, %v290_v52  ;;  %555 = vpow2.f32 %v368_v51  ;;  %v362_v6 = vadd.f32 %v340_v59, %v298_v53 }
 0x170   :  { %v355_v62 = vadd.f32 %v320_v26, %v291_v57  ;;  %v251_v63 = vpop.f32.mrb[4].mxu0  ;;  %v275_v0 = vpop.f32.mrb[4].mxu1  ;;  %557 = vpow2.f32 %v370_v56  ;;  %v363_v17 = vadd.f32 %v340_v59, %v299_v58 }
 0x171   :  { %v372_v2 = vmul.f32 1.442695, %v354_v60  ;;  %v292_v3 = vsub.f32 %v251_v63, %v825_v35  ;;  %v253_v4 = vpop.f32.mrb[5].mxu0  ;;  %v277_v5 = vpop.f32.mrb[5].mxu1  ;;  %v300_v8 = vsub.f32 %v275_v0, %v825_v35  ;;  %v388_v12 = vmul.f32 1.442695, %v362_v6 }
 0x172   :  { %v374_v7 = vmul.f32 1.442695, %v355_v62  ;;  %v293_v11 = vsub.f32 %v253_v4, %v827_v37  ;;  %v301_v13 = vsub.f32 %v277_v5, %v827_v37  ;;  %v421_v49 = vpop.permute.xlu1 %420  ;;  %v426_v56 = vpop.permute.xlu0 %425 }
 0x173   :  { %559 = vpow2.f32 %v372_v2  ;;  %v356_v10 = vadd.f32 %v325_v30, %v292_v3  ;;  %v364_v26 = vadd.f32 %v345_v9, %v300_v8 }
 0x174   :  { %v257_v15 = vpop.f32.mrb[6].mxu0  ;;  %v281_v16 = vpop.f32.mrb[6].mxu1  ;;  %561 = vpow2.f32 %v374_v7  ;;  %v357_v19 = vadd.f32 %v325_v30, %v293_v11  ;;  %v390_v30 = vmul.f32 1.442695, %v363_v17  ;;  %v365_v32 = vadd.f32 %v345_v9, %v301_v13 }
 0x175   :  { %v376_v18 = vmul.f32 1.442695, %v356_v10  ;;  %v259_v20 = vpop.f32.mrb[7].mxu0  ;;  %v283_v21 = vpop.f32.mrb[7].mxu1  ;;  %v294_v24 = vsub.f32 %v257_v15, %v825_v35  ;;  %v302_v25 = vsub.f32 %v281_v16, %v825_v35  ;;  %v392_v40 = vmul.f32 1.442695, %v364_v26 }
 0x176   :  { %v378_v27 = vmul.f32 1.442695, %v357_v19  ;;  %v295_v28 = vsub.f32 %v259_v20, %v827_v37  ;;  %v303_v31 = vsub.f32 %v283_v21, %v827_v37  ;;  %v394_v37 = vmul.f32 1.442695, %v365_v32  ;;  %v431_v1 = vpop.permute.xlu1 %430  ;;  %v436_v6 = vpop.permute.xlu0 %435 }
 0x177   :  { %563 = vpow2.f32 %v376_v18  ;;  %v358_v29 = vadd.f32 %v823_v34, %v294_v24  ;;  %v366_v39 = vadd.f32 %v350_v22, %v302_v25 }
 0x178   :  { %565 = vpow2.f32 %v384_v14  ;;  %v359_v33 = vadd.f32 %v823_v34, %v295_v28  ;;  %v367_v44 = vadd.f32 %v350_v22, %v303_v31 }
 0x179   :  { %567 = vpow2.f32 %v378_v27  ;;  %v380_v38 = vmul.f32 1.442695, %v358_v29  ;;  %v556_v35 = vpop.eup %555  ;;  %v396_v48 = vmul.f32 1.442695, %v366_v39 }
 0x17a   :  { %569 = vpow2.f32 %v386_v23  ;;  %v382_v41 = vmul.f32 1.442695, %v359_v33  ;;  %v558_v42 = vpop.eup %557  ;;  %v448_v46 = vmul.f32 %v556_v35, %v411_v36  ;;  %v398_v53 = vmul.f32 1.442695, %v367_v44  ;;  %v441_v18 = vpop.permute.xlu1 %440 }
 0x17b   :  { %571 = vpow2.f32 %v388_v12  ;;  %v449_v50 = vmul.f32 %v558_v42, %v411_v36  ;;  %v446_v12 = vpop.permute.xlu0 %445 }
 0x17c   :  { %573 = vpow2.f32 %v380_v38 }
 0x17d   :  { %v560_v45 = vpop.eup %559  ;;  %575 = vpow2.f32 %v390_v30 }
 0x17e   :  { %v450_v47 = vmul.f32 %v560_v45, %v416_v43  ;;  %577 = vpow2.f32 %v382_v41  ;;  %v562_v34 = vpop.eup %561 }
 0x17f   :  { %579 = vpow2.f32 %v392_v40  ;;  %v451_v52 = vmul.f32 %v562_v34, %v416_v43 }
 0x180   :  { %v464_v51 = vadd.f32 %v450_v47, %v448_v46  ;;  %581 = vpow2.f32 %v394_v37 }
 0x181   :  { %v564_v54 = vpop.eup %563  ;;  %v477_v57 = vadd.f32 %v451_v52, %v449_v50  ;;  %583 = vpow2.f32 %v396_v48 }
 0x182   :  { %v566_v55 = vpop.eup %565  ;;  %v452_v58 = vmul.f32 %v564_v54, %v421_v49  ;;  %585 = vpow2.f32 %v398_v53 }
 0x183   :  { %v568_v59 = vpop.eup %567  ;;  %v456_v8 = vmul.f32 %v566_v55, %v431_v1 }
 0x184   :  { %v570_v60 = vpop.eup %569  ;;  %v465_v61 = vadd.f32 %v464_v51, %v452_v58  ;;  %v453_v62 = vmul.f32 %v568_v59, %v421_v49 }
 0x185   :  { %v572_v63 = vpop.eup %571  ;;  %v457_v13 = vmul.f32 %v570_v60, %v431_v1 }
 0x186   :  { %v574_v0 = vpop.eup %573  ;;  %v478_v2 = vadd.f32 %v477_v57, %v453_v62  ;;  %v458_v14 = vmul.f32 %v572_v63, %v436_v6 }
 0x187   :  { %v576_v3 = vpop.eup %575  ;;  %v454_v4 = vmul.f32 %v574_v0, %v426_v56 }
 0x188   :  { %v578_v5 = vpop.eup %577  ;;  %v459_v19 = vmul.f32 %v576_v3, %v436_v6 }
 0x189   :  { %v580_v7 = vpop.eup %579  ;;  %v466_v9 = vadd.f32 %v465_v61, %v454_v4  ;;  %v455_v10 = vmul.f32 %v578_v5, %v426_v56 }
 0x18a   :  { %v582_v11 = vpop.eup %581  ;;  %v460_v20 = vmul.f32 %v580_v7, %v441_v18 }
 0x18b   :  { %v467_v15 = vadd.f32 %v466_v9, %v456_v8  ;;  %v479_v16 = vadd.f32 %v478_v2, %v455_v10  ;;  %v584_v17 = vpop.eup %583  ;;  %v461_v24 = vmul.f32 %v582_v11, %v441_v18 }
 0x18c   :  { %v586_v23 = vpop.eup %585  ;;  %v462_v25 = vmul.f32 %v584_v17, %v446_v12 }
 0x18d   :  { %v480_v21 = vadd.f32 %v479_v16, %v457_v13  ;;  %v468_v22 = vadd.f32 %v467_v15, %v458_v14  ;;  %v463_v28 = vmul.f32 %v586_v23, %v446_v12 }
 0x18f   :  { %v469_v26 = vadd.f32 %v468_v22, %v460_v20  ;;  %v481_v27 = vadd.f32 %v480_v21, %v459_v19 }
 0x191   :  { %v470_v29 = vadd.f32 %v469_v26, %v462_v25  ;;  %v482_v31 = vadd.f32 %v481_v27, %v461_v24 }
 0x193   :  { %v471_v30 = vrot.slane %v470_v29, 4  ;;  %v483_v32 = vadd.f32 %v482_v31, %v463_v28 }
 0x195   :  { %v472_v33 = vadd.f32 %v471_v30, %v470_v29  ;;  %v484_v36 = vrot.slane %v483_v32, 4 }
 0x197   :  { %v473_v38 = vrot.slane %v472_v33, 2  ;;  %v485_v39 = vadd.f32 %v484_v36, %v483_v32 }
 0x199   :  { %v474_v35 = vadd.f32 %v473_v38, %v472_v33  ;;  %v486_v40 = vrot.slane %v485_v39, 2 }
 0x19b   :  { %v475_v41 = vrot.slane %v474_v35, 1  ;;  %v487_v42 = vadd.f32 %v486_v40, %v485_v39 }
 0x19d   :  { %v476_v43 = vadd.f32 %v475_v41, %v474_v35  ;;  %v488_v44 = vrot.slane %v487_v42, 1 }
 0x19f   :  { %v489_v45 = vadd.f32 %v488_v44, %v487_v42  ;;  %v490_v37 = vadd.f32 -0.1, %v476_v43 }
 0x1a1   :  { %v491_v46 = vadd.f32 -0.1, %v489_v45  ;;  %v535_v47 = vclamps-f32 %v490_v37, 16.118095 }
 0x1a3   :  { %v536_v48 = vclamps-f32 %v491_v46, 16.118095  ;;  %v496_v34 = vsub.f32 0.0, %v535_v47 }
 0x1a5   :  { %v497_v49 = vsub.f32 0.0, %v536_v48  ;;  %v499_v50 = vsel %vm498_vm1, %v535_v47, %v496_v34 }
 0x1a7   :  { %v500_v51 = vsel %vm498_vm1, %v536_v48, %v497_v49 }
 0x1a8   :  { %v503_v52 = vcombine.low %v499_v50, %v500_v51 }
 0x1aa   :  { %537 = vst.sshfl [vmem:[#allocation2] sm:$0x33 pattern:$0x76325410] %v503_v52 }
 0x1ab   :  { %598 = shalt.err (!%p595_p4)
}
 0x1ac   :  { %s599_s23 = scalar_lea.hbm %s863_s4, 64 }
 0x1ad   :  { %p600_p5 = scmp.ne.s32.totalorder %s863_s4, %s599_s23  ;;  %p603_p6 = scmp.lt.u32.totalorder %s599_s23, %s863_s4 }
 0x1af   :  { %p605_p7 = pnand %p603_p6, %p600_p5 }
 0x1b1   :  { %608 = shalt.err (!%p605_p7)
}
 0x1b2   :  { %522 = dma.vmem_to_hbm [thread:$0]  %s520_s19, 64, %s863_s4, [#allocation3]  }
 0x1b3   :  { %609 = dma.done.wait [#allocation3], 64  }
 0x1b4   :  { %610 = vsyncadd [#allocation3], 4294967232 }
 0x1b5   :  { %526 = vsyncpa [#allocation3], 1 }

</bundles_post_ra>
